<compile_context>
chip_gen: v7x
topology: tpu7x:2x2x1
jax: 0.10.0
libtpu: 0.0.40
codegen_flags: <defaults>
</compile_context>

<pallas_src>
import functools

import jax
import jax.numpy as jnp
from jax.experimental import pallas as pl
from jax.experimental.pallas import tpu as pltpu


def _round_up(x, m):
    return ((x + m - 1) // m) * m


# -----------------------------------------------------------------------------
# Kernel
# -----------------------------------------------------------------------------
def _transe_tile_kernel(ent_idx_ref, rel_idx_ref,     # SMEM scalar prefetch (flat 1-D int32)
                        ent_hbm_ref,                  # (E, D) entity table, HBM (pl.ANY)
                        rel_ref,                      # (R, D) relation table, VMEM-resident
                        out_ref,                      # (1, 1) f32 per-tile partial sum
                        h_slab, t_slab, r_slab,       # (2*TB, D) VMEM gather slabs
                        dma_sem,                      # DMA completion semaphore
                        *, tb, batch, margin):
    t = pl.program_id(0)

    # ---- 1) issue per-row HBM->VMEM gather DMAs for the entity rows --------
    # Slab row layout: rows [0, TB) = positive triples, rows [TB, 2*TB) = negative.
    @pl.loop(0, tb)
    def _issue(r):
        g = t * tb + r
        ph = ent_idx_ref[4 * g + 0]
        pt = ent_idx_ref[4 * g + 1]
        nh = ent_idx_ref[4 * g + 2]
        nt = ent_idx_ref[4 * g + 3]
        pltpu.make_async_copy(ent_hbm_ref.at[pl.ds(ph, 1), :],
                              h_slab.at[pl.ds(r, 1), :], dma_sem).start()
        pltpu.make_async_copy(ent_hbm_ref.at[pl.ds(nh, 1), :],
                              h_slab.at[pl.ds(tb + r, 1), :], dma_sem).start()
        pltpu.make_async_copy(ent_hbm_ref.at[pl.ds(pt, 1), :],
                              t_slab.at[pl.ds(r, 1), :], dma_sem).start()
        pltpu.make_async_copy(ent_hbm_ref.at[pl.ds(nt, 1), :],
                              t_slab.at[pl.ds(tb + r, 1), :], dma_sem).start()

    # ---- 2) gather relation rows from the VMEM-resident table --------------
    # (pure VMEM work; helps hide the entity-gather DMA latency)
    @pl.loop(0, tb)
    def _gather_rel(r):
        g = t * tb + r
        pr = rel_idx_ref[2 * g + 0]
        nr = rel_idx_ref[2 * g + 1]
        r_slab[pl.ds(r, 1), :] = rel_ref[pl.ds(pr, 1), :]
        r_slab[pl.ds(tb + r, 1), :] = rel_ref[pl.ds(nr, 1), :]

    # ---- 3) wait for all 4*TB entity row DMAs -------------------------------
    # All row copies are the same size, so waiting with an equal-sized
    # reconstructed descriptor drains the semaphore correctly.
    @pl.loop(0, 4 * tb)
    def _wait(_):
        pltpu.make_async_copy(ent_hbm_ref.at[pl.ds(0, 1), :],
                              h_slab.at[pl.ds(0, 1), :], dma_sem).wait()

    # ---- 4) fused batched compute (pos and neg in one (2*TB, D) block) ------
    h = h_slab[...].astype(jnp.float32)     # cast on load (bf16-safe)
    tt = t_slab[...].astype(jnp.float32)
    rr = r_slab[...].astype(jnp.float32)
    d = h + rr - tt                                        # (2*TB, D)
    s = jnp.sqrt(jnp.sum(d * d, axis=1, keepdims=True))    # (2*TB, 1) L2 norms
    pos_s = s[:tb]                                         # (TB, 1)
    neg_s = s[tb:]                                         # (TB, 1)
    hinge = jnp.maximum(margin + pos_s - neg_s, 0.0)       # (TB, 1)

    # mask out padded rows of the last tile
    rows = jax.lax.broadcasted_iota(jnp.int32, (tb, 1), 0)
    valid = (t * tb + rows) < batch
    masked = jnp.where(valid, hinge, 0.0)
    out_ref[...] = jnp.sum(masked, axis=0, keepdims=True)  # (1, 1) partial sum


# -----------------------------------------------------------------------------
# Wrapper
# -----------------------------------------------------------------------------
@functools.partial(jax.jit, static_argnames=("margin", "tile_b"))
def transe_forward(entity_emb, relation_emb, pos_triples, neg_triples,
                   margin=1.0, tile_b=128):
    """Equivalent of TransE.forward. Returns a scalar float32 loss.

    entity_emb / relation_emb must be lane-padded (D % 128 == 0); pad once at
    init with `pad_embeddings` -- NOT inside this jitted function.
    """
    E, D = entity_emb.shape
    R, Dr = relation_emb.shape
    assert D == Dr and D % 128 == 0, "pad embedding tables once with pad_embeddings()"

    pos = pos_triples.astype(jnp.int32)
    neg = neg_triples.astype(jnp.int32)
    B = pos.shape[0]

    # triples-per-grid-step (static, multiple of 8, >= 8)
    tb = min(_round_up(tile_b, 8), _round_up(B, 8))
    num_tiles = (B + tb - 1) // tb
    b_pad = num_tiles * tb
    if b_pad != B:
        pad = b_pad - B
        pos = jnp.pad(pos, ((0, pad), (0, 0)))   # pad rows gather index 0, masked in-kernel
        neg = jnp.pad(neg, ((0, pad), (0, 0)))

    # Flat 1-D index arrays for SMEM scalar prefetch.
    #   ent_idx[4*g + {0,1,2,3}] = pos_head, pos_tail, neg_head, neg_tail of triple g
    #   rel_idx[2*g + {0,1}]     = pos_rel, neg_rel of triple g
    ent_idx = jnp.stack([pos[:, 0], pos[:, 2], neg[:, 0], neg[:, 2]], axis=1).reshape(-1)
    rel_idx = jnp.stack([pos[:, 1], neg[:, 1]], axis=1).reshape(-1)

    kernel = functools.partial(_transe_tile_kernel,
                               tb=tb, batch=B, margin=float(margin))

    ent_bytes = entity_emb.dtype.itemsize
    cost = pl.CostEstimate(flops=8 * B * D,
                           transcendentals=2 * B,
                           bytes_accessed=6 * B * D * ent_bytes + 24 * B)

    grid_spec = pltpu.PrefetchScalarGridSpec(
        num_scalar_prefetch=2,
        grid=(num_tiles,),
        in_specs=[
            pl.BlockSpec(memory_space=pl.ANY),                  # entity table stays in HBM
            pl.BlockSpec((R, D), lambda t, ei, ri: (0, 0)),     # relation table VMEM-resident
        ],
        out_specs=pl.BlockSpec((1, 1), lambda t, ei, ri: (t, 0)),
        scratch_shapes=[
            pltpu.VMEM((2 * tb, D), entity_emb.dtype),          # head slab  [pos; neg]
            pltpu.VMEM((2 * tb, D), entity_emb.dtype),          # tail slab  [pos; neg]
            pltpu.VMEM((2 * tb, D), relation_emb.dtype),        # rel  slab  [pos; neg]
            pltpu.SemaphoreType.DMA,
        ],
    )

    # VMEM budget: resident relation block + 3 gather slabs (+ headroom).
    vmem_needed = (2 * R * D * relation_emb.dtype.itemsize
                   + 3 * 2 * tb * D * ent_bytes + (4 << 20))
    vmem_limit = int(min(max(vmem_needed, 32 << 20), 64 << 20))   # v7x has 64 MiB physical

    partials = pl.pallas_call(
        kernel,
        out_shape=jax.ShapeDtypeStruct((num_tiles, 1), jnp.float32),
        grid_spec=grid_spec,
        compiler_params=pltpu.CompilerParams(
            dimension_semantics=("parallel",),   # tiles independent -> v7x 2-TC split
            vmem_limit_bytes=vmem_limit),
        cost_estimate=cost,
    )(ent_idx, rel_idx, entity_emb, relation_emb)

    return jnp.sum(partials) / B


# -----------------------------------------------------------------------------
# Params / reference
# -----------------------------------------------------------------------------
def pad_embeddings(emb):
    """Zero-pad the embedding dim to a multiple of 128. Call ONCE at init."""
    pad = (-emb.shape[1]) % 128
    if pad:
        emb = jnp.pad(emb, ((0, 0), (0, pad)))
    return emb


def init_transe_params(key, num_entities, num_relations, embedding_dim):
    """xavier_uniform init + L2-normalize entity rows (matches the nn.Module)."""
    k_ent, k_rel = jax.random.split(key)
    bound_e = (6.0 / (num_entities + embedding_dim)) ** 0.5
    ent = jax.random.uniform(k_ent, (num_entities, embedding_dim),
                             jnp.float32, -bound_e, bound_e)
    ent = ent / jnp.linalg.norm(ent, axis=1, keepdims=True)
    bound_r = (6.0 / (num_relations + embedding_dim)) ** 0.5
    rel = jax.random.uniform(k_rel, (num_relations, embedding_dim),
                             jnp.float32, -bound_r, bound_r)
    # store pre-padded (lane-dense); zero pad preserves the L2 norms / loss
    return pad_embeddings(ent), pad_embeddings(rel)


def transe_reference(entity_emb, relation_emb, pos_triples, neg_triples, margin=1.0):
    ph = entity_emb[pos_triples[:, 0]]
    pr = relation_emb[pos_triples[:, 1]]
    pt = entity_emb[pos_triples[:, 2]]
    nh = entity_emb[neg_triples[:, 0]]
    nr = relation_emb[neg_triples[:, 1]]
    nt = entity_emb[neg_triples[:, 2]]
    pos_score = jnp.linalg.norm(ph + pr - pt, axis=1)
    neg_score = jnp.linalg.norm(nh + nr - nt, axis=1)
    return jnp.mean(jax.nn.relu(margin + pos_score - neg_score))


if __name__ == "__main__":
    num_entities, num_relations, embedding_dim = 32, 8, 128
    batch = 20
    margin = 1.0

    key = jax.random.PRNGKey(0)
    k_params, k_ph, k_pr, k_pt, k_nh, k_nr, k_nt = jax.random.split(key, 7)

    entity_emb, relation_emb = init_transe_params(
        k_params, num_entities, num_relations, embedding_dim)

    pos_triples = jnp.stack([
        jax.random.randint(k_ph, (batch,), 0, num_entities),
        jax.random.randint(k_pr, (batch,), 0, num_relations),
        jax.random.randint(k_pt, (batch,), 0, num_entities),
    ], axis=1).astype(jnp.int32)
    neg_triples = jnp.stack([
        jax.random.randint(k_nh, (batch,), 0, num_entities),
        jax.random.randint(k_nr, (batch,), 0, num_relations),
        jax.random.randint(k_nt, (batch,), 0, num_entities),
    ], axis=1).astype(jnp.int32)

    ref = jax.block_until_ready(
        transe_reference(entity_emb, relation_emb, pos_triples, neg_triples,
                         margin=margin))

    # default single-tile path (tb covers the whole padded batch)
    loss = jax.block_until_ready(
        transe_forward(entity_emb, relation_emb, pos_triples, neg_triples,
                       margin=margin))
    assert jnp.allclose(loss, ref, atol=1e-5, rtol=1e-5), (loss, ref)

    # multi-tile path (3 tiles of 8, last tile partially masked)
    loss_tiled = jax.block_until_ready(
        transe_forward(entity_emb, relation_emb, pos_triples, neg_triples,
                       margin=margin, tile_b=8))
    assert jnp.allclose(loss_tiled, ref, atol=1e-5, rtol=1e-5), (loss_tiled, ref)

    print("KERNEL_OK")
</pallas_src>

<mosaic_0001>
module attributes {stable_mosaic.version = 11 : i64} {
  func.func @_transe_tile_kernel(%arg0: i32, %arg1: memref<96xi32, #tpu.memory_space<smem>>, %arg2: memref<48xi32, #tpu.memory_space<smem>>, %arg3: memref<32x128xf32, #tpu.memory_space<any>>, %arg4: memref<8x128xf32, #tpu.memory_space<vmem>>, %arg5: memref<1x1xf32, #tpu.memory_space<vmem>>, %arg6: memref<48x128xf32, #tpu.memory_space<vmem>>, %arg7: memref<48x128xf32, #tpu.memory_space<vmem>>, %arg8: memref<48x128xf32, #tpu.memory_space<vmem>>, %arg9: memref<!tpu.dma_semaphore, #tpu.memory_space<semaphore_mem>>) attributes {dimension_semantics = [#tpu.dimension_semantics<parallel>], iteration_bounds = array<i64: 1>, scalar_prefetch = 2 : i64, scratch_operands = 4 : i64, tpu.core_type = #tpu.core_type<tc>, window_params = [{}, {pipeline_mode = #tpu.pipeline_mode<synchronous>, transform_indices = @transform_1, window_bounds = array<i64: 8, 128>}, {transform_indices = @transform_2, window_bounds = array<i64: 1, 1>}]} {
    %c0_i32 = arith.constant 0 : i32
    %c24_i32 = arith.constant 24 : i32
    %0 = arith.addi %c0_i32, %c24_i32 : i32
    %c1_i32 = arith.constant 1 : i32
    scf.for %arg10 = %c0_i32 to %0 step %c1_i32  : i32 {
      %c1_i32_19 = arith.constant 1 : i32
      %30 = arith.muli %arg10, %c1_i32_19 : i32
      %c0_i32_20 = arith.constant 0 : i32
      %31 = arith.addi %c0_i32_20, %30 : i32
      %c24_i32_21 = arith.constant 24 : i32
      %32 = arith.muli %arg0, %c24_i32_21 : i32
      %33 = arith.addi %32, %31 : i32
      %c4_i32 = arith.constant 4 : i32
      %34 = arith.muli %c4_i32, %33 : i32
      %c0_i32_22 = arith.constant 0 : i32
      %35 = arith.addi %34, %c0_i32_22 : i32
      %36 = arith.index_cast %35 : i32 to index
      %37 = memref.load %arg1[%36] : memref<96xi32, #tpu.memory_space<smem>>
      %c4_i32_23 = arith.constant 4 : i32
      %38 = arith.muli %c4_i32_23, %33 : i32
      %c1_i32_24 = arith.constant 1 : i32
      %39 = arith.addi %38, %c1_i32_24 : i32
      %40 = arith.index_cast %39 : i32 to index
      %41 = memref.load %arg1[%40] : memref<96xi32, #tpu.memory_space<smem>>
      %c4_i32_25 = arith.constant 4 : i32
      %42 = arith.muli %c4_i32_25, %33 : i32
      %c2_i32 = arith.constant 2 : i32
      %43 = arith.addi %42, %c2_i32 : i32
      %44 = arith.index_cast %43 : i32 to index
      %45 = memref.load %arg1[%44] : memref<96xi32, #tpu.memory_space<smem>>
      %c4_i32_26 = arith.constant 4 : i32
      %46 = arith.muli %c4_i32_26, %33 : i32
      %c3_i32 = arith.constant 3 : i32
      %47 = arith.addi %46, %c3_i32 : i32
      %48 = arith.index_cast %47 : i32 to index
      %49 = memref.load %arg1[%48] : memref<96xi32, #tpu.memory_space<smem>>
      %c0_i32_27 = arith.constant 0 : i32
      %50 = tpu.memref_slice %arg3[%37, %c0_i32_27] : memref<32x128xf32, #tpu.memory_space<any>> -> memref<1x128xf32, #tpu.memory_space<any>>
      %c0_i32_28 = arith.constant 0 : i32
      %51 = tpu.memref_slice %arg6[%31, %c0_i32_28] : memref<48x128xf32, #tpu.memory_space<vmem>> -> memref<1x128xf32, #tpu.memory_space<vmem>>
      tpu.enqueue_dma source(%50 : memref<1x128xf32, #tpu.memory_space<any>>) target(%51 : memref<1x128xf32, #tpu.memory_space<vmem>>) target_semaphore(%arg9 : memref<!tpu.dma_semaphore, #tpu.memory_space<semaphore_mem>>)
      %c24_i32_29 = arith.constant 24 : i32
      %52 = arith.addi %c24_i32_29, %31 : i32
      %c0_i32_30 = arith.constant 0 : i32
      %53 = tpu.memref_slice %arg3[%45, %c0_i32_30] : memref<32x128xf32, #tpu.memory_space<any>> -> memref<1x128xf32, #tpu.memory_space<any>>
      %c0_i32_31 = arith.constant 0 : i32
      %54 = tpu.memref_slice %arg6[%52, %c0_i32_31] : memref<48x128xf32, #tpu.memory_space<vmem>> -> memref<1x128xf32, #tpu.memory_space<vmem>>
      tpu.enqueue_dma source(%53 : memref<1x128xf32, #tpu.memory_space<any>>) target(%54 : memref<1x128xf32, #tpu.memory_space<vmem>>) target_semaphore(%arg9 : memref<!tpu.dma_semaphore, #tpu.memory_space<semaphore_mem>>)
      %c0_i32_32 = arith.constant 0 : i32
      %55 = tpu.memref_slice %arg3[%41, %c0_i32_32] : memref<32x128xf32, #tpu.memory_space<any>> -> memref<1x128xf32, #tpu.memory_space<any>>
      %c0_i32_33 = arith.constant 0 : i32
      %56 = tpu.memref_slice %arg7[%31, %c0_i32_33] : memref<48x128xf32, #tpu.memory_space<vmem>> -> memref<1x128xf32, #tpu.memory_space<vmem>>
      tpu.enqueue_dma source(%55 : memref<1x128xf32, #tpu.memory_space<any>>) target(%56 : memref<1x128xf32, #tpu.memory_space<vmem>>) target_semaphore(%arg9 : memref<!tpu.dma_semaphore, #tpu.memory_space<semaphore_mem>>)
      %c24_i32_34 = arith.constant 24 : i32
      %57 = arith.addi %c24_i32_34, %31 : i32
      %c0_i32_35 = arith.constant 0 : i32
      %58 = tpu.memref_slice %arg3[%49, %c0_i32_35] : memref<32x128xf32, #tpu.memory_space<any>> -> memref<1x128xf32, #tpu.memory_space<any>>
      %c0_i32_36 = arith.constant 0 : i32
      %59 = tpu.memref_slice %arg7[%57, %c0_i32_36] : memref<48x128xf32, #tpu.memory_space<vmem>> -> memref<1x128xf32, #tpu.memory_space<vmem>>
      tpu.enqueue_dma source(%58 : memref<1x128xf32, #tpu.memory_space<any>>) target(%59 : memref<1x128xf32, #tpu.memory_space<vmem>>) target_semaphore(%arg9 : memref<!tpu.dma_semaphore, #tpu.memory_space<semaphore_mem>>)
    }
    %c24_i32_0 = arith.constant 24 : i32
    %c0_i32_1 = arith.constant 0 : i32
    %c24_i32_2 = arith.constant 24 : i32
    %1 = arith.addi %c0_i32_1, %c24_i32_2 : i32
    %c1_i32_3 = arith.constant 1 : i32
    scf.for %arg10 = %c0_i32_1 to %1 step %c1_i32_3  : i32 {
      %c1_i32_19 = arith.constant 1 : i32
      %30 = arith.muli %arg10, %c1_i32_19 : i32
      %c0_i32_20 = arith.constant 0 : i32
      %31 = arith.addi %c0_i32_20, %30 : i32
      %c24_i32_21 = arith.constant 24 : i32
      %32 = arith.muli %arg0, %c24_i32_21 : i32
      %33 = arith.addi %32, %31 : i32
      %c2_i32 = arith.constant 2 : i32
      %34 = arith.muli %c2_i32, %33 : i32
      %c0_i32_22 = arith.constant 0 : i32
      %35 = arith.addi %34, %c0_i32_22 : i32
      %36 = arith.index_cast %35 : i32 to index
      %37 = memref.load %arg2[%36] : memref<48xi32, #tpu.memory_space<smem>>
      %c2_i32_23 = arith.constant 2 : i32
      %38 = arith.muli %c2_i32_23, %33 : i32
      %c1_i32_24 = arith.constant 1 : i32
      %39 = arith.addi %38, %c1_i32_24 : i32
      %40 = arith.index_cast %39 : i32 to index
      %41 = memref.load %arg2[%40] : memref<48xi32, #tpu.memory_space<smem>>
      %42 = arith.index_cast %37 : i32 to index
      %c0_25 = arith.constant 0 : index
      %43 = vector.load %arg4[%42, %c0_25] : memref<8x128xf32, #tpu.memory_space<vmem>>, vector<1x128xf32>
      %44 = arith.index_cast %31 : i32 to index
      %c0_26 = arith.constant 0 : index
      %45 = vector.load %arg8[%44, %c0_26] : memref<48x128xf32, #tpu.memory_space<vmem>>, vector<1x128xf32>
      tpu.vector_store %arg8[%44, %c0_26], %43 {strides = array<i32>} : memref<48x128xf32, #tpu.memory_space<vmem>>, vector<1x128xf32>,
      %46 = arith.index_cast %41 : i32 to index
      %c0_27 = arith.constant 0 : index
      %47 = vector.load %arg4[%46, %c0_27] : memref<8x128xf32, #tpu.memory_space<vmem>>, vector<1x128xf32>
      %c24_i32_28 = arith.constant 24 : i32
      %48 = arith.addi %c24_i32_28, %31 : i32
      %49 = arith.index_cast %48 : i32 to index
      %c0_29 = arith.constant 0 : index
      %50 = vector.load %arg8[%49, %c0_29] : memref<48x128xf32, #tpu.memory_space<vmem>>, vector<1x128xf32>
      tpu.vector_store %arg8[%49, %c0_29], %47 {strides = array<i32>} : memref<48x128xf32, #tpu.memory_space<vmem>>, vector<1x128xf32>,
    }
    %c24_i32_4 = arith.constant 24 : i32
    %c0_i32_5 = arith.constant 0 : i32
    %c96_i32 = arith.constant 96 : i32
    %2 = arith.addi %c0_i32_5, %c96_i32 : i32
    %c1_i32_6 = arith.constant 1 : i32
    scf.for %arg10 = %c0_i32_5 to %2 step %c1_i32_6  : i32 {
      %c0_i32_19 = arith.constant 0 : i32
      %c0_i32_20 = arith.constant 0 : i32
      %30 = tpu.memref_slice %arg3[%c0_i32_19, %c0_i32_20] : memref<32x128xf32, #tpu.memory_space<any>> -> memref<1x128xf32, #tpu.memory_space<any>>
      %c0_i32_21 = arith.constant 0 : i32
      %c0_i32_22 = arith.constant 0 : i32
      %31 = tpu.memref_slice %arg6[%c0_i32_21, %c0_i32_22] : memref<48x128xf32, #tpu.memory_space<vmem>> -> memref<1x128xf32, #tpu.memory_space<vmem>>
      tpu.wait_dma2 semaphore(%arg9 : memref<!tpu.dma_semaphore, #tpu.memory_space<semaphore_mem>>) src(%30 : memref<1x128xf32, #tpu.memory_space<any>>) dst(%31 : memref<1x128xf32, #tpu.memory_space<vmem>>)
    }
    %c0 = arith.constant 0 : index
    %c0_7 = arith.constant 0 : index
    %3 = vector.load %arg6[%c0, %c0_7] : memref<48x128xf32, #tpu.memory_space<vmem>>, vector<48x128xf32>
    %c0_8 = arith.constant 0 : index
    %c0_9 = arith.constant 0 : index
    %4 = vector.load %arg7[%c0_8, %c0_9] : memref<48x128xf32, #tpu.memory_space<vmem>>, vector<48x128xf32>
    %c0_10 = arith.constant 0 : index
    %c0_11 = arith.constant 0 : index
    %5 = vector.load %arg8[%c0_10, %c0_11] : memref<48x128xf32, #tpu.memory_space<vmem>>, vector<48x128xf32>
    %6 = arith.addf %3, %5 : vector<48x128xf32>
    %7 = arith.subf %6, %4 : vector<48x128xf32>
    %8 = arith.mulf %7, %7 : vector<48x128xf32>
    %cst = arith.constant dense<0.000000e+00> : vector<48xf32>
    %9 = vector.multi_reduction <add>, %8, %cst [1] : vector<48x128xf32> to vector<48xf32>
    %10 = vector.shape_cast %9 : vector<48xf32> to vector<48x1xf32>
    %11 = math.sqrt %10 : vector<48x1xf32>
    %12 = vector.extract_strided_slice %11 {offsets = [0, 0], sizes = [24, 1], strides = [1, 1]} : vector<48x1xf32> to vector<24x1xf32>
    %13 = vector.extract_strided_slice %11 {offsets = [24, 0], sizes = [24, 1], strides = [1, 1]} : vector<48x1xf32> to vector<24x1xf32>
    %cst_12 = arith.constant 1.000000e+00 : f32
    %14 = vector.broadcast %cst_12 : f32 to vector<24x1xf32>
    %15 = arith.addf %14, %12 : vector<24x1xf32>
    %16 = arith.subf %15, %13 : vector<24x1xf32>
    %cst_13 = arith.constant 0.000000e+00 : f32
    %17 = vector.broadcast %cst_13 : f32 to vector<24x1xf32>
    %18 = arith.maximumf %16, %17 : vector<24x1xf32>
    %19 = tpu.iota {dimensions = array<i32: 0>} : vector<24x1xi32>
    %c24_i32_14 = arith.constant 24 : i32
    %20 = arith.muli %arg0, %c24_i32_14 : i32
    %21 = vector.broadcast %20 : i32 to vector<24x1xi32>
    %22 = arith.addi %21, %19 : vector<24x1xi32>
    %c20_i32 = arith.constant 20 : i32
    %23 = vector.broadcast %c20_i32 : i32 to vector<24x1xi32>
    %24 = arith.cmpi slt, %22, %23 : vector<24x1xi32>
    %cst_15 = arith.constant 0.000000e+00 : f32
    %25 = vector.broadcast %cst_15 : f32 to vector<24x1xf32>
    %26 = arith.select %24, %18, %25 : vector<24x1xi1>, vector<24x1xf32>
    %cst_16 = arith.constant dense<0.000000e+00> : vector<1xf32>
    %27 = vector.multi_reduction <add>, %26, %cst_16 [0] : vector<24x1xf32> to vector<1xf32>
    %28 = vector.shape_cast %27 : vector<1xf32> to vector<1x1xf32>
    %c0_17 = arith.constant 0 : index
    %c0_18 = arith.constant 0 : index
    %29 = vector.load %arg5[%c0_17, %c0_18] : memref<1x1xf32, #tpu.memory_space<vmem>>, vector<1x1xf32>
    tpu.vector_store %arg5[%c0_17, %c0_18], %28 {strides = array<i32>} : memref<1x1xf32, #tpu.memory_space<vmem>>, vector<1x1xf32>,
    return
  }
  func.func @transform_1(%arg0: i32, %arg1: memref<96xi32, #tpu.memory_space<smem>>, %arg2: memref<48xi32, #tpu.memory_space<smem>>) -> (i32, i32) {
    %c0_i32 = arith.constant 0 : i32
    %c0_i32_0 = arith.constant 0 : i32
    %c0_i32_1 = arith.constant 0 : i32
    return %c0_i32, %c0_i32_0 : i32, i32
  }
  func.func @transform_2(%arg0: i32, %arg1: memref<96xi32, #tpu.memory_space<smem>>, %arg2: memref<48xi32, #tpu.memory_space<smem>>) -> (i32, i32) {
    %c0_i32 = arith.constant 0 : i32
    %c0_i32_0 = arith.constant 0 : i32
    return %arg0, %c0_i32 : i32, i32
  }
}

</mosaic_0001>

<bundles_post_ra>
// kernel: transe_forward.1
= control target key start
LH: loop header
LB: loop body
LE: loop exit
PB: predicated region body
PF: predicated region fallthrough
CT: control target
= control target key end

     0   :  { %s669_s0 = inlined_call_operand.vmem [shape: s32[96], index: 0, kind: input, shape index: {}]   ;;  %s670_s2 = inlined_call_operand.vmem [shape: f32[32,128], index: 2, kind: input, shape index: {}]   ;;  %s671_s3 = inlined_call_operand.vmem [shape: f32[8,128], index: 3, kind: input, shape index: {}]   ;;  %s672_s4 = inlined_call_operand.hbm [shape: f32[1,1], index: 4, kind: output, shape index: {}]   ;;  %s673_s1 = inlined_call_operand.vmem [shape: s32[48], index: 1, kind: input, shape index: {}]  }
   0x1   :  { %s9_s17 = sshll.u32 %s669_s0, 4  ;;  %s13_s20 = sshll.u32 %s673_s1, 4  ;;  %s10_s17 = int_to_ptr.vmem [resolvable:$true] %s9_s17  ;;  %s14_s20 = int_to_ptr.vmem [resolvable:$true] %s13_s20 }
   0x2   :  { %s516_s21 = scalar_lea.vmem %s10_s17, 16  ;;  %p521_p1 = scmp.lt.s32.totalorder %s10_s17, %s10_s17 }
   0x3   :  { %p517_p0 = scmp.ne.s32.totalorder %s10_s17, %s516_s21  ;;  %p522_p2 = scmp.lt.s32.totalorder %s516_s21, %s516_s21 }
   0x5   :  { %p523_p3 = por %p522_p2, %p521_p1 }
   0x7   :  { %p524_p4 = pnand %p523_p3, %p517_p0 }
   0x9   :  { %527 = shalt.err (!%p524_p4)  }
   0xa   :  { %s592_s22 = smov [#allocation7]   ;;  %s528_s23 = scalar_lea.vmem %s14_s20, 16 }
   0xb   :  { %12 = dma.vmem_to_smem %s10_s17, 16, %s592_s22, [#allocation6] }
   0xc   :  { %p529_p5 = scmp.ne.s32.totalorder %s14_s20, %s528_s23  ;;  %p533_p6 = scmp.lt.s32.totalorder %s14_s20, %s14_s20 }
   0xd   :  { %p534_p7 = scmp.lt.s32.totalorder %s528_s23, %s528_s23 }
   0xf   :  { %p535_p8 = por %p534_p7, %p533_p6 }
  0x11   :  { %p536_p9 = pnand %p535_p8, %p529_p5 }
  0x13   :  { %539 = shalt.err (!%p536_p9)  }
  0x14   :  { %s593_s0 = smov [#allocation8]  }
  0x15   :  { %16 = dma.vmem_to_smem %s14_s20, 16, %s593_s0, [#allocation6] }
  0x16   :  { %574 = dma.done.wait [#allocation6], 32 }
  0x17   :  { %575 = vsyncadd [#allocation6], 4294967264 }
  0x18   :  { %18 = sfence }
  0x19   :  { %19 = vsyncpa [#allocation10], 0  ;;  %s626_s1 = smov 0  }
  0x1a LB: > { %s469_s24 = sshll.u32 %s582_s1, 2  ;;  %s39_s9 = scalar_lea.vmem [#allocation2], %s582_s1  ;;  %s582_s1 = sphi %s626_s1, %s27_s1  }
  0x1b   : > { %s31_s25 = sld [smem:[#allocation7 + %s469_s24]]  ;;  %s32_s26 = sadd.s32 1, %s469_s24 }
  0x1c   : > { %s33_s27 = sld [smem:[#allocation7 + %s32_s26]]  ;;  %s34_s28 = sadd.s32 2, %s469_s24 }
  0x1d   : > { %s35_s29 = sld [smem:[#allocation7 + %s34_s28]]  ;;  %s36_s30 = sadd.s32 3, %s469_s24 }
  0x1e   : > { %s37_s5 = sld [smem:[#allocation7 + %s36_s30]] }
  0x21   : > { %s38_s8 = scalar_lea.vmem %s670_s2, %s31_s25 }
  0x22   : > { %v57_v0 = vld [vmem:[%s38_s8] sm:$0x1] }
  0x23   : > { %58 = vst [vmem:[%s39_s9] sm:$0x1] %v57_v0 }
  0x24   : > { %83 = vsyncadd [#allocation5], 16  ;;  %s85_s12 = scalar_lea.vmem %s670_s2, %s35_s29 }
  0x25   : > { %v104_v1 = vld [vmem:[%s85_s12] sm:$0x1] }
  0x26   : > { %471 = vst [vmem:[%s39_s9 + $0x18] sm:$0x1] %v104_v1 }
  0x27   : > { %130 = vsyncadd [#allocation5], 16  ;;  %s131_s15 = scalar_lea.vmem %s670_s2, %s33_s27  ;;  %s132_s16 = scalar_lea.vmem [#allocation3], %s582_s1 }
  0x28   : > { %v150_v2 = vld [vmem:[%s131_s15] sm:$0x1] }
  0x29   : > { %151 = vst [vmem:[%s132_s16] sm:$0x1] %v150_v2 }
  0x2a   : > { %176 = vsyncadd [#allocation5], 16  ;;  %s177_s19 = scalar_lea.vmem %s670_s2, %s37_s5 }
  0x2b   : > { %v196_v3 = vld [vmem:[%s177_s19] sm:$0x1] }
  0x2c   : > { %473 = vst [vmem:[%s132_s16 + $0x18] sm:$0x1] %v196_v3 }
  0x2d   : > { %222 = vsyncadd [#allocation5], 16  ;;  %s27_s1 = sadd.s32 1, %s582_s1  }
  0x2e   : > { %p24_p10 = scmp.ge.s32.totalorder %s27_s1, 24  }
  0x2f   :  { %s584_s20 = smov (%p24_p10), 0  }
  0x30   :  { %26 = sbr.rel (!%p24_p10) target bundleno = 26 (0x1a), region = 217 }
  0x37 LB: > { %s474_s21 = sshll.u32 %s586_s20, 1  ;;  %s237_s30 = scalar_lea.vmem [#allocation4], %s586_s20  ;;  %s586_s20 = sphi %s584_s20, %s228_s20  }
  0x38   : > { %s232_s22 = sld [smem:[#allocation8 + %s474_s21]]  ;;  %s233_s23 = sadd.s32 1, %s474_s21 }
  0x39   : > { %s234_s0 = sld [smem:[#allocation8 + %s233_s23]]  ;;  %s228_s20 = sadd.s32 1, %s586_s20  }
  0x3a   : > { %p225_p11 = scmp.ge.s32.totalorder %s228_s20, 24  }
  0x3b   :  { %s588_s2 = smov (%p225_p11), 0  }
  0x3c   :  { %227 = sbr.rel (!%p225_p11) target bundleno = 55 (0x37), region = 228 }
  0x3e   : > { %s235_s26 = scalar_lea.vmem %s671_s3, %s232_s22 }
  0x3f   : > { %v236_v4 = vld [vmem:[%s235_s26] sm:$0x1]  ;;  %s239_s29 = scalar_lea.vmem %s671_s3, %s234_s0 }
  0x40   : > { %238 = vst [vmem:[%s237_s30] sm:$0x1] %v236_v4  ;;  %v240_v5 = vld [vmem:[%s239_s29] sm:$0x1] }
  0x41   : > { %475 = vst [vmem:[%s237_s30 + $0x18] sm:$0x1] %v240_v5 }
  0x43 LB: > { %576 = dma.done.wait [#allocation5], 16  ;;  %s590_s2 = sphi %s588_s2, %s249_s2  }
  0x44   : > { %577 = vsyncadd [#allocation5], 4294967280  ;;  %s249_s2 = sadd.s32 1, %s590_s2  }
  0x45   : > { %p246_p12 = scmp.ge.s32.totalorder %s249_s2, 96  }
  0x46   :  { %v255_v6 = vld [vmem:[#allocation2 + $0x10] sm:$0xff] (%p246_p12)  ;;  %v261_v7 = vld [vmem:[#allocation3 + $0x10] sm:$0xff] (%p246_p12)  ;;  %v256_v14 = vld [vmem:[#allocation2 + $0x18] sm:$0xff] (%p246_p12)  ;;  %v352_v46 = vlaneseq (%p246_p12)  ;;  %s594_s3 = smov (%p246_p12), [#allocation9]   ;;  %vm375_vm13 = vcmask (%p246_p12), 0  }
  0x47   :  { %248 = sbr.rel (!%p246_p12) target bundleno = 67 (0x43), region = 239  ;;  %v253_v10 = vld [vmem:[#allocation2] sm:$0xff] (%p246_p12)  ;;  %v259_v11 = vld [vmem:[#allocation3] sm:$0xff] (%p246_p12)  ;;  %v262_v15 = vld [vmem:[#allocation3 + $0x18] sm:$0xff] (%p246_p12)  ;;  %s383_s1 = sshll.u32 (%p246_p12), %s594_s3, 4  ;;  %s384_s1 = int_to_ptr.vmem [resolvable:$true] %s383_s1 }
  0x48   :  { %v267_v8 = vld [vmem:[#allocation4 + $0x10] sm:$0xff] (%p246_p12)  ;;  %v265_v12 = vld [vmem:[#allocation4] sm:$0xff] (%p246_p12)  ;;  %v268_v16 = vld [vmem:[#allocation4 + $0x18] sm:$0xff] (%p246_p12)  ;;  %v353_v49 = vshrl.u32 (%p246_p12), %v352_v46, 7  ;;  %s540_s5 = scalar_lea.vmem (%p246_p12), %s384_s1, 16  ;;  %s544_s6 = scalar_lea.vmem (%p246_p12), %s384_s1, 32 }
  0x49   :  { %v273_v9 = vadd.f32 (%p246_p12), %v267_v8, %v255_v6  ;;  %v271_v13 = vadd.f32 (%p246_p12), %v265_v12, %v253_v10  ;;  %v274_v18 = vadd.f32 (%p246_p12), %v268_v16, %v256_v14  ;;  %v254_v19 = vld [vmem:[#allocation2 + $0x8] sm:$0xff] (%p246_p12)  ;;  %v260_v20 = vld [vmem:[#allocation3 + $0x8] sm:$0xff] (%p246_p12)  ;;  %v257_v30 = vld [vmem:[#allocation2 + $0x20] sm:$0xff] (%p246_p12)  ;;  %p541_p13 = scmp.ne.s32.totalorder (%p246_p12), %s384_s1, %s540_s5  ;;  %p545_p0 = scmp.lt.s32.totalorder (%p246_p12), %s384_s1, %s384_s1 }
  0x4a   :  { %v266_v21 = vld [vmem:[#allocation4 + $0x8] sm:$0xff] (%p246_p12)  ;;  %v264_v25 = vld [vmem:[#allocation3 + $0x28] sm:$0xff] (%p246_p12)  ;;  %v263_v31 = vld [vmem:[#allocation3 + $0x20] sm:$0xff] (%p246_p12)  ;;  %v355_v54 = vadd.s32 (%p246_p12), 16, %v353_v49  ;;  %p546_p1 = scmp.lt.s32.totalorder (%p246_p12), %s544_s6, %s540_s5 }
  0x4b   :  { %v279_v17 = vsub.f32 (%p246_p12), %v273_v9, %v261_v7  ;;  %v277_v22 = vsub.f32 (%p246_p12), %v271_v13, %v259_v11  ;;  %v272_v23 = vadd.f32 (%p246_p12), %v266_v21, %v254_v19  ;;  %v258_v24 = vld [vmem:[#allocation2 + $0x28] sm:$0xff] (%p246_p12)  ;;  %v280_v28 = vsub.f32 (%p246_p12), %v274_v18, %v262_v15  ;;  %v269_v32 = vld [vmem:[#allocation4 + $0x20] sm:$0xff] (%p246_p12) }
  0x4c   :  { %v270_v26 = vld [vmem:[#allocation4 + $0x28] sm:$0xff] (%p246_p12)  ;;  %v275_v35 = vadd.f32 (%p246_p12), %v269_v32, %v257_v30  ;;  %vm363_vm12 = vcmp.lt.s32.totalorder (%p246_p12), %v355_v54, 20  ;;  %p547_p2 = por (%p246_p12), %p546_p1, %p545_p0 }
  0x4d   :  { %v285_v27 = vmul.f32 (%p246_p12), %v279_v17, %v279_v17  ;;  %v276_v29 = vadd.f32 (%p246_p12), %v270_v26, %v258_v24  ;;  %v283_v33 = vmul.f32 (%p246_p12), %v277_v22, %v277_v22  ;;  %v278_v34 = vsub.f32 (%p246_p12), %v272_v23, %v260_v20 }
  0x4e   :  { %v286_v36 = vmul.f32 %v280_v28, %v280_v28  ;;  %v281_v39 = vsub.f32 %v275_v35, %v263_v31  ;;  %p548_p3 = pnand %p547_p2, %p541_p13 }
  0x4f   :  { %293 = vadd.xlane.f32.xlu1 %v285_v27  ;;  %v282_v37 = vsub.f32 %v276_v29, %v264_v25  ;;  %289 = vadd.xlane.f32.xlu0 %v283_v33  ;;  %v284_v38 = vmul.f32 %v278_v34, %v278_v34 }
  0x50   :  { %v287_v41 = vmul.f32 %v281_v39, %v281_v39 }
  0x51   :  { %v288_v40 = vmul.f32 %v282_v37, %v282_v37 }
  0x53   :  { %295 = vadd.xlane.f32.xlu1 %v286_v36  ;;  %291 = vadd.xlane.f32.xlu0 %v284_v38 }
  0x57   :  { %299 = vadd.xlane.f32.xlu1 %v288_v40  ;;  %297 = vadd.xlane.f32.xlu0 %v287_v41 }
  0xdc   :  { %v294_v42 = vpop.xlane.xlu1 %293  ;;  %v290_v43 = vpop.xlane.xlu0 %289 }
  0xdd   :  { %504 = vrsqrt.f32 %v294_v42  ;;  %vm303_vm0 = vcmp.eq.f32.partialorder %v290_v43, inf  ;;  %vm317_vm1 = vcmp.eq.f32.partialorder %v294_v42, inf  ;;  %vm319_vm2 = vcmp.eq.f32.partialorder %v294_v42, 0.0 }
  0xde   :  { %506 = vrsqrt.f32 %v290_v43  ;;  %v320_v56 = vand.u32 2147483648, %v294_v42  ;;  %vm305_vm3 = vcmp.eq.f32.partialorder %v290_v43, 0.0  ;;  %v306_v60 = vand.u32 2147483648, %v290_v43 }
  0xe0   :  { %v296_v44 = vpop.xlane.xlu1 %295  ;;  %v292_v45 = vpop.xlane.xlu0 %291 }
  0xe1   :  { %508 = vrsqrt.f32 %v296_v44  ;;  %vm324_vm4 = vcmp.eq.f32.partialorder %v296_v44, inf  ;;  %vm326_vm5 = vcmp.eq.f32.partialorder %v296_v44, 0.0  ;;  %v327_v62 = vand.u32 2147483648, %v296_v44 }
  0xe2   :  { %510 = vrsqrt.f32 %v292_v45  ;;  %vm310_vm6 = vcmp.eq.f32.partialorder %v292_v45, inf  ;;  %v313_v2 = vand.u32 2147483648, %v292_v45  ;;  %vm312_vm7 = vcmp.eq.f32.partialorder %v292_v45, 0.0 }
  0xe4   :  { %v300_v47 = vpop.xlane.xlu1 %299  ;;  %v298_v48 = vpop.xlane.xlu0 %297 }
  0xe5   :  { %512 = vrsqrt.f32 %v300_v47  ;;  %vm338_vm8 = vcmp.eq.f32.partialorder %v300_v47, inf  ;;  %vm340_vm9 = vcmp.eq.f32.partialorder %v300_v47, 0.0  ;;  %v341_v11 = vand.u32 2147483648, %v300_v47 }
  0xe6   :  { %514 = vrsqrt.f32 %v298_v48  ;;  %vm331_vm10 = vcmp.eq.f32.partialorder %v298_v48, inf  ;;  %vm333_vm11 = vcmp.eq.f32.partialorder %v298_v48, 0.0  ;;  %v334_v15 = vand.u32 2147483648, %v298_v48 }
  0xe7   :  { %v505_v50 = vpop.eup %504 }
  0xe8   :  { %v507_v51 = vpop.eup %506  ;;  %v316_v52 = vmul.f32 %v505_v50, %v294_v42 }
  0xe9   :  { %v302_v53 = vmul.f32 %v507_v51, %v290_v43 }
  0xea   :  { %v318_v59 = vsel %vm317_vm1, %v294_v42, %v316_v52 }
  0xeb   :  { %v509_v55 = vpop.eup %508  ;;  %v304_v57 = vsel %vm303_vm0, %v290_v43, %v302_v53  ;;  %v321_v5 = vsel %vm319_vm2, %v320_v56, %v318_v59 }
  0xec   :  { %v511_v58 = vpop.eup %510  ;;  %v323_v61 = vmul.f32 %v509_v55, %v296_v44  ;;  %v307_v0 = vsel %vm305_vm3, %v306_v60, %v304_v57  ;;  %v345_v13 = vadd.f32 1.0, %v321_v5 }
  0xed   :  { %v309_v63 = vmul.f32 %v511_v58, %v292_v45  ;;  %v343_v10 = vadd.f32 1.0, %v307_v0 }
  0xee   :  { %v325_v1 = vsel %vm324_vm4, %v296_v44, %v323_v61 }
  0xef   :  { %v513_v3 = vpop.eup %512  ;;  %v311_v4 = vsel %vm310_vm6, %v292_v45, %v309_v63  ;;  %v328_v9 = vsel %vm326_vm5, %v327_v62, %v325_v1 }
  0xf0   :  { %v515_v6 = vpop.eup %514  ;;  %v337_v7 = vmul.f32 %v513_v3, %v300_v47  ;;  %v314_v8 = vsel %vm312_vm7, %v313_v2, %v311_v4  ;;  %v346_v19 = vsub.f32 %v343_v10, %v328_v9 }
  0xf1   :  { %v330_v12 = vmul.f32 %v515_v6, %v298_v48  ;;  %v344_v17 = vadd.f32 1.0, %v314_v8 }
  0xf2   :  { %v339_v14 = vsel %vm338_vm8, %v300_v47, %v337_v7  ;;  %v349_v25 = vmax.f32 %v346_v19, 0.0 }
  0xf3   :  { %v342_v16 = vsel %vm340_vm9, %v341_v11, %v339_v14  ;;  %v332_v18 = vsel %vm331_vm10, %v298_v48, %v330_v12 }
  0xf4   :  { %v348_v20 = vsub.f32 %v345_v13, %v342_v16  ;;  %v335_v21 = vsel %vm333_vm11, %v334_v15, %v332_v18 }
  0xf5   :  { %v347_v22 = vsub.f32 %v344_v17, %v335_v21 }
  0xf6   :  { %v351_v23 = vmax.f32 %v348_v20, 0.0 }
  0xf7   :  { %v350_v24 = vmax.f32 %v347_v22, 0.0 }
  0xf8   :  { %v366_v26 = vsel %vm363_vm12, %v351_v23, 0.0 }
  0xf9   :  { %v367_v27 = vadd.f32 %v350_v24, %v349_v25 }
  0xfb   :  { %v368_v28 = vadd.f32 %v367_v27, %v366_v26 }
  0xfd   :  { %v369_v29 = vrot.slane %v368_v28, 4 }
  0xff   :  { %v370_v30 = vadd.f32 %v369_v29, %v368_v28 }
 0x101   :  { %v371_v31 = vrot.slane %v370_v30, 2 }
 0x103   :  { %v372_v32 = vadd.f32 %v371_v31, %v370_v30 }
 0x105   :  { %v373_v33 = vrot.slane %v372_v32, 1 }
 0x107   :  { %v374_v34 = vadd.f32 %v373_v33, %v372_v32 }
 0x109   :  { %376 = vst.msk [vmem:[#allocation9] sm:$0x1] %vm375_vm13, %v374_v34 }
 0x10a   :  { %551 = shalt.err (!%p548_p3)
}
 0x10b   :  { %s552_s9 = scalar_lea.hbm %s672_s4, 16 }
 0x10c   :  { %p553_p4 = scmp.ne.s32.totalorder %s672_s4, %s552_s9  ;;  %p556_p5 = scmp.lt.u32.totalorder %s552_s9, %s672_s4 }
 0x10e   :  { %p558_p6 = pnand %p556_p5, %p553_p4 }
 0x110   :  { %561 = shalt.err (!%p558_p6)
}
 0x111   :  { %386 = dma.vmem_to_hbm [thread:$0]  %s384_s1, 16, %s672_s4, [#allocation10]  }
 0x112   :  { %578 = dma.done.wait [#allocation10], 16  }
 0x113   :  { %579 = vsyncadd [#allocation10], 4294967280 }
 0x114   :  { %390 = vsyncpa [#allocation10], 1 }
 0x115   :  { %391 = vsyncmov [#allocation5] }
 0x118   :  { %s392_s16 = vpop.sfrf %391 }
 0x119   :  { %p476_p7 = scmp.ne.s32.totalorder %s392_s16, 0 }
 0x11b   :  { %396 = shalt.err (%p476_p7)  }

</bundles_post_ra>
